<compile_context>
chip_gen: v7x
topology: tpu7x:2x2x1
jax: 0.10.0
libtpu: 0.0.40
codegen_flags: <defaults>
</compile_context>

<pallas_src>
import functools

import jax
import jax.numpy as jnp
from jax.experimental import pallas as pl
from jax.experimental.pallas import tpu as pltpu


def _round_up(x: int, m: int) -> int:
    return ((x + m - 1) // m) * m


def _fused_mlp_kernel(*refs, num_hidden: int):
    """refs = (x_ref, w1, b1, ..., wH, bH, w_out, b_out, o_ref).

    Computes the whole MLP for one batch tile; activations live in vregs/VMEM.
    """
    x_ref = refs[0]
    o_ref = refs[-1]
    layer_refs = refs[1:-1]

    x = x_ref[...].astype(jnp.float32)
    for i in range(num_hidden):
        w = layer_refs[2 * i][...]
        b = layer_refs[2 * i + 1][...]          # (1, n), broadcasts over rows
        x = jnp.dot(x, w, preferred_element_type=jnp.float32) + b
        x = jnp.maximum(x, 0.0)                 # ReLU on f32 accumulator (VPU filler)
        # Dropout: identity in eval/inference mode.
        # TODO(synk): training-mode dropout mask via pltpu.prng_random_bits here.
    w_out = layer_refs[2 * num_hidden][...]
    b_out = layer_refs[2 * num_hidden + 1][...]
    y = jnp.dot(x, w_out, preferred_element_type=jnp.float32) + b_out
    o_ref[...] = y.astype(o_ref.dtype)          # lane-dense (tile_m, 128k) store


def qnetwork_forward(state, hidden_params, output_params, *, tile_m: int = 512):
    """state: [batch, state_size] -> action values: [batch, action_size].

    Single fused pallas_call; grid tiles the batch, weights stay VMEM-resident.
    """
    m, k = state.shape
    w_out, b_out = output_params
    n_act = w_out.shape[1]

    # --- Lane-dense output padding (avoid masked vst on tiny action_size) ------
    n_pad = max(128, _round_up(n_act, 128))
    w_out_p = jnp.zeros((w_out.shape[0], n_pad), w_out.dtype).at[:, :n_act].set(w_out)
    b_out_p = jnp.zeros((n_pad,), b_out.dtype).at[:n_act].set(b_out)

    # --- Batch tiling (sublane-aligned), pad batch to a whole number of tiles --
    tile_m = min(tile_m, _round_up(m, 8))
    tile_m = _round_up(tile_m, 8)
    m_pad = _round_up(m, tile_m)
    if m_pad != m:
        state = jnp.pad(state, ((0, m_pad - m), (0, 0)))
    grid = (m_pad // tile_m,)

    # --- Assemble inputs + specs: activations tiled, weights/biases resident ---
    inputs = [state]
    in_specs = [pl.BlockSpec((tile_m, k), lambda i: (i, 0))]
    for w, b in hidden_params:
        b2d = b.reshape(1, -1)
        inputs += [w, b2d]
        in_specs += [
            pl.BlockSpec(w.shape, lambda i: (0, 0)),
            pl.BlockSpec(b2d.shape, lambda i: (0, 0)),
        ]
    b_out_2d = b_out_p.reshape(1, n_pad)
    inputs += [w_out_p, b_out_2d]
    in_specs += [
        pl.BlockSpec(w_out_p.shape, lambda i: (0, 0)),
        pl.BlockSpec(b_out_2d.shape, lambda i: (0, 0)),
    ]

    kernel = functools.partial(_fused_mlp_kernel, num_hidden=len(hidden_params))
    out = pl.pallas_call(
        kernel,
        out_shape=jax.ShapeDtypeStruct((m_pad, n_pad), state.dtype),
        grid=grid,
        in_specs=in_specs,
        out_specs=pl.BlockSpec((tile_m, n_pad), lambda i: (i, 0)),
        compiler_params=pltpu.CompilerParams(
            dimension_semantics=("parallel",),      # 2-TC sharding on v7x
            vmem_limit_bytes=64 * 1024 * 1024,      # budget for v7x's 64 MiB VMEM
        ),
    )(*inputs)

    return out[:m, :n_act]


def init_qnetwork_params(key, state_size, action_size, linear_sizes):
    """Deterministic parameter init (uniform, fan-in scaled, like nn.Linear)."""
    sizes = [state_size] + [int(s) for s in linear_sizes.split(",")]
    params = []
    for i in range(1, len(sizes)):
        key, kw, kb = jax.random.split(key, 3)
        bound = 1.0 / jnp.sqrt(sizes[i - 1])
        w = jax.random.uniform(kw, (sizes[i - 1], sizes[i]), jnp.float32,
                               minval=-bound, maxval=bound)
        b = jax.random.uniform(kb, (sizes[i],), jnp.float32,
                               minval=-bound, maxval=bound)
        params.append((w, b))
    key, kw, kb = jax.random.split(key, 3)
    bound = 1.0 / jnp.sqrt(sizes[-1])
    w_out = jax.random.uniform(kw, (sizes[-1], action_size), jnp.float32,
                               minval=-bound, maxval=bound)
    b_out = jax.random.uniform(kb, (action_size,), jnp.float32,
                               minval=-bound, maxval=bound)
    return params, (w_out, b_out)


def qnetwork_ref(state, hidden_params, output_params):
    """Pure-JAX reference for correctness checking (eval-mode dropout = identity)."""
    x = state
    for w, b in hidden_params:
        x = jnp.maximum(x @ w + b, 0.0)
    w_out, b_out = output_params
    return x @ w_out + b_out


if __name__ == "__main__":
    batch = 64            # small, but > tile_m below so the batch grid is exercised
    state_size = 32
    action_size = 4
    linear_sizes = "64,32"

    key = jax.random.PRNGKey(0)
    key, k_state = jax.random.split(key)
    state = jax.random.normal(k_state, (batch, state_size), jnp.float32)

    hidden_params, output_params = init_qnetwork_params(
        key, state_size, action_size, linear_sizes)

    out = qnetwork_forward(state, hidden_params, output_params, tile_m=32)
    out = jax.block_until_ready(out)

    ref = qnetwork_ref(state, hidden_params, output_params)
    assert out.shape == (batch, action_size), out.shape
    assert jnp.allclose(out, ref, atol=1e-5, rtol=1e-5), (
        "Pallas output mismatch vs reference")

    print("KERNEL_OK")
</pallas_src>

<mosaic_0001>
module attributes {stable_mosaic.version = 11 : i64} {
  func.func @_fused_mlp_kernel(%arg0: i32, %arg1: memref<32x32xf32, #tpu.memory_space<vmem>>, %arg2: memref<32x64xf32, #tpu.memory_space<vmem>>, %arg3: memref<1x64xf32, #tpu.memory_space<vmem>>, %arg4: memref<64x32xf32, #tpu.memory_space<vmem>>, %arg5: memref<1x32xf32, #tpu.memory_space<vmem>>, %arg6: memref<32x128xf32, #tpu.memory_space<vmem>>, %arg7: memref<1x128xf32, #tpu.memory_space<vmem>>, %arg8: memref<32x128xf32, #tpu.memory_space<vmem>>) attributes {dimension_semantics = [#tpu.dimension_semantics<parallel>], iteration_bounds = array<i64: 2>, scalar_prefetch = 0 : i64, scratch_operands = 0 : i64, tpu.core_type = #tpu.core_type<tc>, window_params = [{transform_indices = @transform_0, window_bounds = array<i64: 32, 32>}, {pipeline_mode = #tpu.pipeline_mode<synchronous>, transform_indices = @transform_1, window_bounds = array<i64: 32, 64>}, {pipeline_mode = #tpu.pipeline_mode<synchronous>, transform_indices = @transform_2, window_bounds = array<i64: 1, 64>}, {pipeline_mode = #tpu.pipeline_mode<synchronous>, transform_indices = @transform_3, window_bounds = array<i64: 64, 32>}, {pipeline_mode = #tpu.pipeline_mode<synchronous>, transform_indices = @transform_4, window_bounds = array<i64: 1, 32>}, {pipeline_mode = #tpu.pipeline_mode<synchronous>, transform_indices = @transform_5, window_bounds = array<i64: 32, 128>}, {pipeline_mode = #tpu.pipeline_mode<synchronous>, transform_indices = @transform_6, window_bounds = array<i64: 1, 128>}, {transform_indices = @transform_7, window_bounds = array<i64: 32, 128>}]} {
    %c0 = arith.constant 0 : index
    %c0_0 = arith.constant 0 : index
    %0 = vector.load %arg1[%c0, %c0_0] : memref<32x32xf32, #tpu.memory_space<vmem>>, vector<32x32xf32>
    %c0_1 = arith.constant 0 : index
    %c0_2 = arith.constant 0 : index
    %1 = vector.load %arg2[%c0_1, %c0_2] : memref<32x64xf32, #tpu.memory_space<vmem>>, vector<32x64xf32>
    %c0_3 = arith.constant 0 : index
    %c0_4 = arith.constant 0 : index
    %2 = vector.load %arg3[%c0_3, %c0_4] : memref<1x64xf32, #tpu.memory_space<vmem>>, vector<1x64xf32>
    %cst = arith.constant dense<0.000000e+00> : vector<32x64xf32>
    %3 = tpu.matmul %0, %1, %cst {dimension_numbers = #tpu.dot_dimension_numbers<[1], [0], [0], [1], [0, 0, 1, 1], [], []>} : vector<32x32xf32>, vector<32x64xf32>, vector<32x64xf32> -> vector<32x64xf32>
    %4 = vector.broadcast %2 : vector<1x64xf32> to vector<32x64xf32>
    %5 = arith.addf %3, %4 : vector<32x64xf32>
    %cst_5 = arith.constant 0.000000e+00 : f32
    %6 = vector.broadcast %cst_5 : f32 to vector<32x64xf32>
    %7 = arith.maximumf %5, %6 : vector<32x64xf32>
    %c0_6 = arith.constant 0 : index
    %c0_7 = arith.constant 0 : index
    %8 = vector.load %arg4[%c0_6, %c0_7] : memref<64x32xf32, #tpu.memory_space<vmem>>, vector<64x32xf32>
    %c0_8 = arith.constant 0 : index
    %c0_9 = arith.constant 0 : index
    %9 = vector.load %arg5[%c0_8, %c0_9] : memref<1x32xf32, #tpu.memory_space<vmem>>, vector<1x32xf32>
    %cst_10 = arith.constant dense<0.000000e+00> : vector<32x32xf32>
    %10 = tpu.matmul %7, %8, %cst_10 {dimension_numbers = #tpu.dot_dimension_numbers<[1], [0], [0], [1], [0, 0, 1, 1], [], []>} : vector<32x64xf32>, vector<64x32xf32>, vector<32x32xf32> -> vector<32x32xf32>
    %11 = vector.broadcast %9 : vector<1x32xf32> to vector<32x32xf32>
    %12 = arith.addf %10, %11 : vector<32x32xf32>
    %cst_11 = arith.constant 0.000000e+00 : f32
    %13 = vector.broadcast %cst_11 : f32 to vector<32x32xf32>
    %14 = arith.maximumf %12, %13 : vector<32x32xf32>
    %c0_12 = arith.constant 0 : index
    %c0_13 = arith.constant 0 : index
    %15 = vector.load %arg6[%c0_12, %c0_13] : memref<32x128xf32, #tpu.memory_space<vmem>>, vector<32x128xf32>
    %c0_14 = arith.constant 0 : index
    %c0_15 = arith.constant 0 : index
    %16 = vector.load %arg7[%c0_14, %c0_15] : memref<1x128xf32, #tpu.memory_space<vmem>>, vector<1x128xf32>
    %cst_16 = arith.constant dense<0.000000e+00> : vector<32x128xf32>
    %17 = tpu.matmul %14, %15, %cst_16 {dimension_numbers = #tpu.dot_dimension_numbers<[1], [0], [0], [1], [0, 0, 1, 1], [], []>} : vector<32x32xf32>, vector<32x128xf32>, vector<32x128xf32> -> vector<32x128xf32>
    %18 = vector.broadcast %16 : vector<1x128xf32> to vector<32x128xf32>
    %19 = arith.addf %17, %18 : vector<32x128xf32>
    %c0_17 = arith.constant 0 : index
    %c0_18 = arith.constant 0 : index
    %20 = vector.load %arg8[%c0_17, %c0_18] : memref<32x128xf32, #tpu.memory_space<vmem>>, vector<32x128xf32>
    tpu.vector_store %arg8[%c0_17, %c0_18], %19 {strides = array<i32>} : memref<32x128xf32, #tpu.memory_space<vmem>>, vector<32x128xf32>,
    return
  }
  func.func @transform_0(%arg0: i32) -> (i32, i32) {
    %c0_i32 = arith.constant 0 : i32
    %c0_i32_0 = arith.constant 0 : i32
    return %arg0, %c0_i32 : i32, i32
  }
  func.func @transform_1(%arg0: i32) -> (i32, i32) {
    %c0_i32 = arith.constant 0 : i32
    %c0_i32_0 = arith.constant 0 : i32
    %c0_i32_1 = arith.constant 0 : i32
    return %c0_i32, %c0_i32_0 : i32, i32
  }
  func.func @transform_2(%arg0: i32) -> (i32, i32) {
    %c0_i32 = arith.constant 0 : i32
    %c0_i32_0 = arith.constant 0 : i32
    %c0_i32_1 = arith.constant 0 : i32
    return %c0_i32, %c0_i32_0 : i32, i32
  }
  func.func @transform_3(%arg0: i32) -> (i32, i32) {
    %c0_i32 = arith.constant 0 : i32
    %c0_i32_0 = arith.constant 0 : i32
    %c0_i32_1 = arith.constant 0 : i32
    return %c0_i32, %c0_i32_0 : i32, i32
  }
  func.func @transform_4(%arg0: i32) -> (i32, i32) {
    %c0_i32 = arith.constant 0 : i32
    %c0_i32_0 = arith.constant 0 : i32
    %c0_i32_1 = arith.constant 0 : i32
    return %c0_i32, %c0_i32_0 : i32, i32
  }
  func.func @transform_5(%arg0: i32) -> (i32, i32) {
    %c0_i32 = arith.constant 0 : i32
    %c0_i32_0 = arith.constant 0 : i32
    %c0_i32_1 = arith.constant 0 : i32
    return %c0_i32, %c0_i32_0 : i32, i32
  }
  func.func @transform_6(%arg0: i32) -> (i32, i32) {
    %c0_i32 = arith.constant 0 : i32
    %c0_i32_0 = arith.constant 0 : i32
    %c0_i32_1 = arith.constant 0 : i32
    return %c0_i32, %c0_i32_0 : i32, i32
  }
  func.func @transform_7(%arg0: i32) -> (i32, i32) {
    %c0_i32 = arith.constant 0 : i32
    %c0_i32_0 = arith.constant 0 : i32
    return %arg0, %c0_i32 : i32, i32
  }
}

</mosaic_0001>

<bundles_post_ra>
// kernel: tpu_custom_call.1
= control target key start
LH: loop header
LB: loop body
LE: loop exit
PB: predicated region body
PF: predicated region fallthrough
CT: control target
= control target key end

     0   :  { %12 = vsyncpa [#allocation3], 0  ;;  %s1819_s0 = inlined_call_operand.hbm [shape: f32[64,32], index: 0, kind: input, shape index: {}]   ;;  %s1820_s1 = inlined_call_operand.hbm [shape: f32[32,64], index: 1, kind: input, shape index: {}]   ;;  %s1821_s2 = inlined_call_operand.hbm [shape: f32[1,64], index: 2, kind: input, shape index: {}]   ;;  %s1822_s3 = inlined_call_operand.hbm [shape: f32[64,32], index: 3, kind: input, shape index: {}]   ;;  %s1823_s4 = inlined_call_operand.hbm [shape: f32[1,32], index: 4, kind: input, shape index: {}]   ;;  %s1824_s5 = inlined_call_operand.hbm [shape: f32[32,128], index: 5, kind: input, shape index: {}]   ;;  %s1825_s6 = inlined_call_operand.hbm [shape: f32[1,128], index: 6, kind: input, shape index: {}]   ;;  %s1826_s7 = inlined_call_operand.hbm [shape: f32[64,128], index: 7, kind: output, shape index: {}]  }
   0x1   :  { %14 = vsyncpa [#allocation3 + $0x1], 0 }
   0x2   :  { %15 = vsyncpa [#allocation6], 0 }
   0x3   :  { %16 = vsyncpa [#allocation9], 0 }
   0x4   :  { %17 = vsyncpa [#allocation12], 0 }
   0x5   :  { %18 = vsyncpa [#allocation4], 0 }
   0x6   :  { %20 = vsyncpa [#allocation4 + $0x1], 0  ;;  %s1464_s24 = smov 0   ;;  %s1466_s25 = smov 0  }
   0x7   :  { %s1468_s26 = smov 0   ;;  %s1470_s27 = smov 0  }
   0x8 LB: > { %s1412_s28 = smov [#allocation5]   ;;  %s1485_s30 = sadd.s32 4294967295, %s1410_s27   ;;  %s1410_s27 = sphi %s1470_s27, %s1854_s27   ;;  %s1406_s26 = sphi %s1468_s26, %s1853_s26   ;;  %s1402_s25 = sphi %s1466_s25, %s1852_s25   ;;  %s1398_s24 = sphi %s1464_s24, %s1851_s24  }
   0x9   : > { %s221_s29 = sshll.u32 %s1412_s28, 4  ;;  %p871_p0 = scmp.ge.s32.totalorder %s1410_s27, 1  ;;  %s1490_s29 = int_to_ptr.vmem [resolvable:$true] %s221_s29 }
   0xa   : > { %p1827_p1 = scmp.eq.s32.totalorder %s1485_s30, 0  ;;  %p209_p2 = scmp.lt.s32.totalorder %s1410_s27, 3 }
   0xb   : > { %s1413_s9 = smov [#allocation8]   ;;  %s1414_s12 = smov [#allocation11]  }
   0xc   : > { %p1492_p3 = pnand %p871_p0, %p209_p2  ;;  %s245_s10 = sshll.u32 %s1413_s9, 4  ;;  %s1505_s10 = int_to_ptr.vmem [resolvable:$true] %s245_s10 }
   0xd   : > { %s269_s13 = sshll.u32 %s1414_s12, 4  ;;  %s1134_s16 = scalar_lea.hbm %s1820_s1, 512  ;;  %s1507_s13 = int_to_ptr.vmem [resolvable:$true] %s269_s13 }
   0xe   : > { %s1831_s8 = scalar_select %p1492_p3, 1, 0 }
   0xf   : > { %p1051_p5 = pneg %p1492_p3  ;;  %p1135_p7 = scmp.ne.s32.totalorder %s1820_s1, %s1134_s16 }
  0x10   : > { %p1141_p11 = scmp.lt.u32.totalorder %s1134_s16, %s1820_s1 }
  0x11   : > { %p1501_p6 = pnand %p1051_p5, %p1827_p1 }
  0x13   : > { %p1517_p8 = pneg %p1501_p6 }
  0x15   : > { %p1137_p9 = pnand %p1517_p8, %p1135_p7 }
  0x17   : > { %p1138_p10 = pneg %p1137_p9 }
  0x19   : > { %p1143_p12 = pnand %p1141_p11, %p1138_p10 }
  0x1b   : > { %1146 = shalt.err (!%p1143_p12)
}
  0x1c   : > { %s1147_s22 = scalar_lea.vmem %s1490_s29, 512  ;;  %p1155_p5 = scmp.lt.s32.totalorder %s1490_s29, %s1490_s29 }
  0x1d   : > { %p1148_p13 = scmp.ne.s32.totalorder %s1490_s29, %s1147_s22  ;;  %p1156_p4 = scmp.lt.s32.totalorder %s1147_s22, %s1147_s22 }
  0x1f   : > { %p1150_p0 = pnand %p1148_p13, %p1517_p8  ;;  %p1157_p7 = por %p1156_p4, %p1155_p5 }
  0x21   : > { %p1151_p2 = pneg %p1150_p0 }
  0x23   : > { %p1158_p9 = pnand %p1157_p7, %p1151_p2 }
  0x25   : > { %1161 = shalt.err (!%p1158_p9)
}
  0x26   : > { %s1829_s23 = smov 128   ;;  %s1416_s28 = smov 8  }
  0x27   : > { %1054 = dma.hbm_to_vmem [thread:$0]  (!%p1501_p6), %s1820_s1, 512, %s1490_s29, [#allocation6], %s1829_s23, %s1829_s23, %s1416_s28  }
  0x28   : > { %s1162_s16 = scalar_lea.hbm %s1822_s3, 1024 }
  0x29   : > { %p1163_p4 = scmp.ne.s32.totalorder %s1822_s3, %s1162_s16  ;;  %p1169_p12 = scmp.lt.u32.totalorder %s1162_s16, %s1822_s3 }
  0x2b   : > { %p1165_p10 = pnand %p1163_p4, %p1517_p8 }
  0x2d   : > { %p1166_p11 = pneg %p1165_p10 }
  0x2f   : > { %p1171_p13 = pnand %p1169_p12, %p1166_p11 }
  0x31   : > { %1174 = shalt.err (!%p1171_p13)
}
  0x32   : > { %s1175_s29 = scalar_lea.vmem %s1505_s10, 1024  ;;  %p1183_p7 = scmp.lt.s32.totalorder %s1505_s10, %s1505_s10 }
  0x33   : > { %p1176_p0 = scmp.ne.s32.totalorder %s1505_s10, %s1175_s29  ;;  %p1184_p9 = scmp.lt.s32.totalorder %s1175_s29, %s1175_s29 }
  0x35   : > { %p1178_p2 = pnand %p1176_p0, %p1517_p8  ;;  %p1185_p4 = por %p1184_p9, %p1183_p7 }
  0x37   : > { %p1179_p5 = pneg %p1178_p2 }
  0x39   : > { %p1186_p10 = pnand %p1185_p4, %p1179_p5 }
  0x3b   : > { %1189 = shalt.err (!%p1186_p10)
}
  0x3c   : > { %1060 = dma.hbm_to_vmem [thread:$0]  (!%p1501_p6), %s1822_s3, 1024, %s1505_s10, [#allocation9], %s1829_s23, %s1829_s23, %s1416_s28  }
  0x3d   : > { %s1190_s15 = scalar_lea.hbm %s1824_s5, 512 }
  0x3e   : > { %p1191_p11 = scmp.ne.s32.totalorder %s1824_s5, %s1190_s15  ;;  %p1197_p0 = scmp.lt.u32.totalorder %s1190_s15, %s1824_s5 }
  0x40   : > { %p1193_p12 = pnand %p1191_p11, %p1517_p8 }
  0x42   : > { %p1194_p13 = pneg %p1193_p12 }
  0x44   : > { %p1199_p2 = pnand %p1197_p0, %p1194_p13 }
  0x46   : > { %1202 = shalt.err (!%p1199_p2)
}
  0x47   : > { %s1203_s10 = scalar_lea.vmem %s1507_s13, 512  ;;  %p1211_p4 = scmp.lt.s32.totalorder %s1507_s13, %s1507_s13 }
  0x48   : > { %p1204_p5 = scmp.ne.s32.totalorder %s1507_s13, %s1203_s10  ;;  %p1212_p10 = scmp.lt.s32.totalorder %s1203_s10, %s1203_s10 }
  0x4a   : > { %p1206_p7 = pnand %p1204_p5, %p1517_p8  ;;  %p1213_p11 = por %p1212_p10, %p1211_p4 }
  0x4c   : > { %p1207_p9 = pneg %p1206_p7 }
  0x4e   : > { %p1214_p12 = pnand %p1213_p11, %p1207_p9 }
  0x50   : > { %1217 = shalt.err (!%p1214_p12)
}
  0x51   : > { %1066 = dma.hbm_to_vmem [thread:$0]  (!%p1501_p6), %s1824_s5, 512, %s1507_s13, [#allocation12], %s1829_s23, %s1829_s23, %s1416_s28  }
  0x52   : > { %s1417_s22 = smov [#allocation7]   ;;  %s1418_s12 = smov [#allocation10]  }
  0x53   : > { %s235_s9 = sshll.u32 %s1417_s22, 4  ;;  %s259_s14 = sshll.u32 %s1418_s12, 4  ;;  %s236_s9 = int_to_ptr.vmem [resolvable:$true] %s235_s9  ;;  %s260_s14 = int_to_ptr.vmem [resolvable:$true] %s259_s14 }
  0x54   : > { %s1218_s17 = scalar_lea.hbm %s1821_s2, 16 }
  0x55   : > { %p1219_p13 = scmp.ne.s32.totalorder %s1821_s2, %s1218_s17  ;;  %p1225_p5 = scmp.lt.u32.totalorder %s1218_s17, %s1821_s2 }
  0x57   : > { %p1221_p0 = pnand %p1219_p13, %p1517_p8 }
  0x59   : > { %p1222_p2 = pneg %p1221_p0 }
  0x5b   : > { %p1227_p7 = pnand %p1225_p5, %p1222_p2 }
  0x5d   : > { %1230 = shalt.err (!%p1227_p7)
}
  0x5e   : > { %s1231_s13 = scalar_lea.vmem %s236_s9, 16  ;;  %s1238_s29 = scalar_lea.vmem %s236_s9, 32 }
  0x5f   : > { %p1232_p9 = scmp.ne.s32.totalorder %s236_s9, %s1231_s13  ;;  %p1239_p11 = scmp.lt.s32.totalorder %s236_s9, %s236_s9 }
  0x60   : > { %p1240_p12 = scmp.lt.s32.totalorder %s1238_s29, %s1231_s13 }
  0x61   : > { %p1234_p4 = pnand %p1232_p9, %p1517_p8 }
  0x62   : > { %p1241_p1 = por %p1240_p12, %p1239_p11 }
  0x63   : > { %p1235_p10 = pneg %p1234_p4 }
  0x65   : > { %p1242_p3 = pnand %p1241_p1, %p1235_p10 }
  0x67   : > { %1245 = shalt.err (!%p1242_p3)
}
  0x68   : > { %1057 = dma.hbm_to_vmem [thread:$0]  (!%p1501_p6), %s1821_s2, 16, %s236_s9, [#allocation6]  }
  0x69   : > { %s1246_s17 = scalar_lea.hbm %s1823_s4, 16 }
  0x6a   : > { %p1247_p13 = scmp.ne.s32.totalorder %s1823_s4, %s1246_s17  ;;  %p1253_p3 = scmp.lt.u32.totalorder %s1246_s17, %s1823_s4 }
  0x6c   : > { %p1249_p0 = pnand %p1247_p13, %p1517_p8 }
  0x6e   : > { %p1250_p1 = pneg %p1249_p0 }
  0x70   : > { %p1255_p2 = pnand %p1253_p3, %p1250_p1 }
  0x72   : > { %1258 = shalt.err (!%p1255_p2)
}
  0x73   : > { %s1259_s13 = scalar_lea.vmem %s260_s14, 16  ;;  %s1266_s9 = scalar_lea.vmem %s260_s14, 32 }
  0x74   : > { %p1260_p5 = scmp.ne.s32.totalorder %s260_s14, %s1259_s13  ;;  %p1267_p4 = scmp.lt.s32.totalorder %s260_s14, %s260_s14 }
  0x75   : > { %p1268_p10 = scmp.lt.s32.totalorder %s1266_s9, %s1259_s13 }
  0x76   : > { %p1262_p7 = pnand %p1260_p5, %p1517_p8 }
  0x77   : > { %p1269_p11 = por %p1268_p10, %p1267_p4 }
  0x78   : > { %p1263_p9 = pneg %p1262_p7 }
  0x7a   : > { %p1270_p12 = pnand %p1269_p11, %p1263_p9 }
  0x7c   : > { %1273 = shalt.err (!%p1270_p12)
}
  0x7d   : > { %1063 = dma.hbm_to_vmem [thread:$0]  (!%p1501_p6), %s1823_s4, 16, %s260_s14, [#allocation9]  }
  0x7e   : > { %s1419_s12 = smov [#allocation13]   ;;  %s1274_s18 = scalar_lea.hbm %s1825_s6, 16 }
  0x7f   : > { %s283_s15 = sshll.u32 %s1419_s12, 4  ;;  %p1275_p13 = scmp.ne.s32.totalorder %s1825_s6, %s1274_s18  ;;  %s284_s15 = int_to_ptr.vmem [resolvable:$true] %s283_s15 }
  0x80   : > { %p1281_p3 = scmp.lt.u32.totalorder %s1274_s18, %s1825_s6 }
  0x81   : > { %p1277_p0 = pnand %p1275_p13, %p1517_p8 }
  0x83   : > { %p1278_p1 = pneg %p1277_p0 }
  0x85   : > { %p1283_p2 = pnand %p1281_p3, %p1278_p1 }
  0x87   : > { %1286 = shalt.err (!%p1283_p2)
}
  0x88   : > { %s1287_s14 = scalar_lea.vmem %s284_s15, 16  ;;  %s1294_s9 = scalar_lea.vmem %s284_s15, 32 }
  0x89   : > { %p1288_p5 = scmp.ne.s32.totalorder %s284_s15, %s1287_s14  ;;  %p1295_p4 = scmp.lt.s32.totalorder %s284_s15, %s284_s15 }
  0x8a   : > { %p1296_p10 = scmp.lt.s32.totalorder %s1294_s9, %s1287_s14 }
  0x8b   : > { %p1290_p7 = pnand %p1288_p5, %p1517_p8 }
  0x8c   : > { %p1297_p11 = por %p1296_p10, %p1295_p4 }
  0x8d   : > { %p1291_p9 = pneg %p1290_p7 }
  0x8f   : > { %p1298_p12 = pnand %p1297_p11, %p1291_p9 }
  0x91   : > { %1301 = shalt.err (!%p1298_p12)
}
  0x92   : > { %1069 = dma.hbm_to_vmem [thread:$0]  (!%p1501_p6), %s1825_s6, 16, %s284_s15, [#allocation12]  }
  0x93   : > { %s870_s19 = sadd.s32 4294967294, %s1410_s27   ;;  %s1649_s11 = sadd.s32 1, %s1410_s27  }
  0x94   : > { %s30_s12 = ssub.s32 %s1410_s27, %s1649_s11  ;;  %s33_s16 = sadd.s32 1, %s1406_s26 }
  0x95   : > { %p31_p8 = scmp.eq.s32.totalorder %s30_s12, 0  ;;  %p40_p13 = scmp.ne.s32.totalorder %s1406_s26, %s1402_s25 }
  0x96   : > { %p41_p0 = scmp.eq.s32.totalorder %s1410_s27, 0  ;;  %p46_p1 = scmp.ne.s32.totalorder %s1402_s25, %s1398_s24 }
  0x97   : > { %s1660_s17 = scalar_select %p31_p8, %s1406_s26, %s33_s16  }
  0x98   : > { %p1662_p3 = por %p41_p0, %p40_p13  ;;  %p1835_p2 = scmp.eq.s32.totalorder %s1485_s30, 0 }
  0x99   : > { %p196_p5 = scmp.eq.s32.totalorder %s1485_s30, 1  ;;  %p202_p7 = scmp.eq.s32.totalorder %s870_s19, 1 }
  0x9a   : > { %p1668_p6 = por %p1835_p2, %p46_p1  ;;  %p1084_p9 = scmp.lt.s32.totalorder %s1410_s27, 2 }
  0x9b   : > { %s294_s20 = sand.u32 1, %s1406_s26   ;;  %p1675_p4 = por %p196_p5, %p40_p13 }
  0x9c   : > { %p1679_p10 = por %p202_p7, %p46_p1  ;;  %s879_s13 = sshll.u32 %s294_s20, 5 }
  0x9d   : > { %s1837_s10 = scalar_select %p1675_p4, 1, 0 }
  0x9e   : > { %s1838_s21 = scalar_select %p1679_p10, 1, 0 }
  0x9f   : > { %s911_s14 = sshll.u32 %s1410_s27, 9  ;;  %s298_s19 = scalar_lea.vmem [#allocation2], %s879_s13 }
  0xa0   : > { %s1687_s22 = scalar_lea.hbm %s1819_s0, %s911_s14  ;;  %s305_s12 = sshll.u32 %s298_s19, 4  ;;  %s1689_s12 = int_to_ptr.vmem [resolvable:$true] %s305_s12 }
  0xa1   : > { %p1693_p11 = pnand %p1084_p9, %p1662_p3  ;;  %s1697_s23 = scalar_lea.sflag [#allocation3], %s294_s20 }
  0xa2   : > { %s1302_s9 = scalar_lea.hbm %s1687_s22, 512  ;;  %s1307_s18 = scalar_lea.hbm %s1819_s0, 1024 }
  0xa3   : > { %p1303_p12 = scmp.ne.s32.totalorder %s1687_s22, %s1302_s9  ;;  %p1304_p8 = pneg %p1693_p11 }
  0xa4   : > { %p1308_p1 = scmp.lt.u32.totalorder %s1687_s22, %s1819_s0  ;;  %p1309_p3 = scmp.lt.u32.totalorder %s1307_s18, %s1302_s9 }
  0xa5   : > { %p1305_p13 = pnand %p1304_p8, %p1303_p12  ;;  %p1311_p5 = scmp.lt.u32.totalorder %s1302_s9, %s1687_s22 }
  0xa6   : > { %p1310_p2 = por %p1309_p3, %p1308_p1 }
  0xa7   : > { %p1306_p0 = pneg %p1305_p13 }
  0xa8   : > { %p1312_p7 = por %p1311_p5, %p1310_p2 }
  0xaa   : > { %p1313_p9 = pnand %p1312_p7, %p1306_p0 }
  0xac   : > { %1316 = shalt.err (!%p1313_p9)
}
  0xad   : > { %s1317_s20 = scalar_lea.vmem %s1689_s12, 512  ;;  %s1420_s13 = smov [#allocation2]  }
  0xae   : > { %p1318_p12 = scmp.ne.s32.totalorder %s1689_s12, %s1317_s20  ;;  %s1322_s14 = sshll.u32 %s1420_s13, 4  ;;  %s1323_s14 = int_to_ptr.vmem [resolvable:$false] %s1322_s14 }
  0xaf   : > { %s1324_s29 = scalar_lea.vmem %s1323_s14, 1024  ;;  %p1325_p4 = scmp.lt.s32.totalorder %s1689_s12, %s1323_s14 }
  0xb0   : > { %p1320_p13 = pnand %p1318_p12, %p1304_p8  ;;  %p1326_p1 = scmp.lt.s32.totalorder %s1324_s29, %s1317_s20 }
  0xb2   : > { %p1321_p10 = pneg %p1320_p13  ;;  %p1327_p3 = por %p1326_p1, %p1325_p4 }
  0xb4   : > { %p1328_p2 = pnand %p1327_p3, %p1321_p10 }
  0xb6   : > { %1331 = shalt.err (!%p1328_p2)
}
  0xb7   : > { %s1840_s9 = smov 128   ;;  %p1841_p8 = scmp.ne.s32.totalorder %s1831_s8, 0 }
  0xb8   : > { %1073 = dma.hbm_to_vmem [thread:$0]  (!%p1693_p11), %s1687_s22, 512, %s1689_s12, %s1697_s23, %s1840_s9, %s1840_s9, %s1416_s28  }
  0xb9   : > { %317 = sbr.rel (%p1841_p8) target bundleno = 884 (0x374), region = 48  ;;  %s1731_s18 = sand.u32 (!%p1841_p8), 1, %s1402_s25  }
  0xba   : > { %s883_s19 = sshll.u32 (!%p1841_p8), %s1731_s18, 5  ;;  %s320_s20 = scalar_lea.sflag (!%p1841_p8), [#allocation3], %s1731_s18 }
  0xbb   : > { %s1737_s16 = scalar_lea.vmem (!%p1841_p8), [#allocation2], %s883_s19 }
  0xc0   : > { %1377 = dma.done.wait (%p1668_p6), %s320_s20, 512  }
  0xc1   : > { %1379 = vsyncadd (%p1668_p6), %s320_s20, 4294966784  ;;  %p1842_p4 = scmp.eq.s32.totalorder %s1485_s30, 0 }
  0xc3   : > { %1381 = dma.done.wait (%p1842_p4), [#allocation6], 528   ;;  %p1843_p10 = pmov %p1842_p4 }
  0xc4   : > { %p1844_p11 = pmov %p1842_p4 }
  0xc5   : > { %1383 = vsyncadd (%p1843_p10), [#allocation6], 4294966768 }
  0xc6   : > { %1385 = dma.done.wait (%p1844_p11), [#allocation9], 1040   ;;  %p1845_p0 = pmov %p1842_p4 }
  0xc8   : > { %1387 = vsyncadd (%p1845_p0), [#allocation9], 4294966256  ;;  %p1846_p5 = pmov %p1845_p0 }
  0xc9   : > { %p1847_p7 = pmov %p1845_p0 }
  0xca   : > { %1389 = dma.done.wait (%p1846_p5), [#allocation12], 528  }
  0xcb   : > { %1391 = vsyncadd (%p1847_p7), [#allocation12], 4294966768  ;;  %vm395_vm0 = vcmask 261120   ;;  %v384_v0 = vld [vmem:[#allocation5] sm:$0xff]  ;;  %v385_v1 = vld [vmem:[#allocation5 + $0x8] sm:$0xff]  ;;  %vm512_vm1 = vcmask 523264  }
  0xcc   : > { %v386_v2 = vld [vmem:[#allocation5 + $0x10] sm:$0xff]  ;;  %v991_v3 = vpack.c.bf16 %v385_v1, %v384_v0  ;;  %v387_v4 = vld [vmem:[#allocation5 + $0x18] sm:$0xff]  ;;  %v380_v5 = vld [vmem:[%s1737_s16] sm:$0xff]  ;;  %s377_s8 = scalar_lea.vmem [#allocation14], %s883_s19  ;;  %s912_s28 = sshll.u32 %s1485_s30, 9 }
  0xcd   : > { %v995_v6 = vpack.c.bf16 %v387_v4, %v386_v2  ;;  %949 = vmatprep.mubr.msk.f32.mxu0 %vm395_vm0, %v380_v5  ;;  %v497_v7 = vld [vmem:[#allocation8] sm:$0xff]  ;;  %v498_v8 = vld [vmem:[#allocation8 + $0x8] sm:$0xff]  ;;  %v499_v9 = vld [vmem:[#allocation8 + $0x10] sm:$0xff]  ;;  %s740_s23 = sshll.u32 %s377_s8, 4  ;;  %s1775_s12 = scalar_lea.hbm %s1826_s7, %s912_s28  ;;  %s1770_s23 = int_to_ptr.vmem [resolvable:$true] %s740_s23 }
  0xce   : > { %992 = vmatprep.subr.bf16.mxu0 %v991_v3  ;;  %v500_v10 = vld [vmem:[#allocation8 + $0x18] sm:$0xff]  ;;  %v999_v11 = vpack.c.bf16 %v498_v8, %v497_v7  ;;  %v501_v13 = vld [vmem:[#allocation8 + $0x20] sm:$0xff]  ;;  %v502_v14 = vld [vmem:[#allocation8 + $0x28] sm:$0xff]  ;;  %s727_s13 = scalar_lea.sflag [#allocation4], %s1731_s18  ;;  %s1332_s30 = scalar_lea.vmem %s1770_s23, 512 }
  0xcf   : > { %994 = vmatpush3.bf16.msra.mxu0 %v991_v3  ;;  %v1003_v12 = vpack.c.bf16 %v500_v10, %v499_v9  ;;  %v381_v15 = vld [vmem:[%s1737_s16 + $0x8] sm:$0xff]  ;;  %v1007_v16 = vpack.c.bf16 %v502_v14, %v501_v13  ;;  %v382_v17 = vld [vmem:[%s1737_s16 + $0x10] sm:$0xff]  ;;  %v383_v18 = vld [vmem:[%s1737_s16 + $0x18] sm:$0xff]  ;;  %p1333_p6 = scmp.ne.s32.totalorder %s1770_s23, %s1332_s30  ;;  %p1848_p9 = scmp.ne.s32.totalorder %s1837_s10, 0 }
  0xd0   : > { %996 = vmatprep.subr.bf16.mxu0 %v995_v6  ;;  %1000 = vmatprep.subr.bf16.mxu1 %v999_v11  ;;  %v503_v19 = vld [vmem:[#allocation8 + $0x30] sm:$0xff]  ;;  %v504_v20 = vld [vmem:[#allocation8 + $0x38] sm:$0xff]  ;;  %v614_v22 = vld [vmem:[#allocation11] sm:$0xff]  ;;  %s1421_s14 = smov [#allocation14]  }
  0xd1   : > { %1002 = vmatpush3.bf16.msra.mxu1 %v999_v11  ;;  %v1011_v21 = vpack.c.bf16 %v504_v20, %v503_v19  ;;  %v615_v23 = vld [vmem:[#allocation11 + $0x8] sm:$0xff]  ;;  %v891_v25 = vld [vmem:[#allocation7] ss:$0 sm:$0xff]  ;;  %v616_v38 = vld [vmem:[#allocation11 + $0x10] sm:$0xff]  ;;  %p1334_p12 = pnand %p1333_p6, %p1848_p9  ;;  %s1336_s29 = sshll.u32 %s1421_s14, 4  ;;  %s1337_s29 = int_to_ptr.vmem [resolvable:$false] %s1336_s29 }
  0xd2   : > { %1004 = vmatprep.subr.bf16.mxu1 %v1003_v12  ;;  %v1015_v24 = vpack.c.bf16 %v615_v23, %v614_v22  ;;  %v617_v39 = vld [vmem:[#allocation11 + $0x18] sm:$0xff]  ;;  %v901_v54 = vld [vmem:[#allocation13] ss:$0 sm:$0xff]  ;;  %s1338_s9 = scalar_lea.vmem %s1337_s29, 1024  ;;  %p1339_p1 = scmp.lt.s32.totalorder %s1770_s23, %s1337_s29 }
  0xd3   : > { %998 = vmatpush3.bf16.msra.mxu0 %v995_v6  ;;  %v1019_v40 = vpack.c.bf16 %v617_v39, %v616_v38  ;;  %v896_v41 = vld [vmem:[#allocation10] ss:$0 sm:$0xff]  ;;  %p1335_p13 = pneg %p1334_p12  ;;  %p1340_p3 = scmp.lt.s32.totalorder %s1338_s9, %s1332_s30 }
  0xd4   : > { %1016 = vmatprep.subr.bf16.mxu0 %v1015_v24 }
  0xd5   : > { %1006 = vmatpush3.bf16.msra.mxu1 %v1003_v12  ;;  %p1341_p2 = por %p1340_p3, %p1339_p1 }
  0xd6   : > { %950 = vmatmul.mubr.msk.f32.vlgmr.msra.gmra.mrb[0].mxu0 %vm395_vm0, %v381_v15  ;;  %1008 = vmatprep.subr.bf16.mxu1 %v1007_v16 }
  0xd7   : > { %952 = vmatprep.mubr.msk.f32.mxu0 %vm395_vm0, %v382_v17  ;;  %1018 = vmatpush3.bf16.msra.mxu0 %v1015_v24  ;;  %p1342_p8 = pnand %p1341_p2, %p1335_p13 }
  0xd8   : > { %1020 = vmatprep.subr.bf16.mxu0 %v1019_v40 }
  0xd9   : > { %1010 = vmatpush3.bf16.msra.mxu1 %v1007_v16 }
  0xda   : > { %953 = vmatmul.mubr.msk.f32.gmra.mrb[2].mxu0 %vm395_vm0, %v383_v18  ;;  %1012 = vmatprep.subr.bf16.mxu1 %v1011_v21 }
  0xdb   : > { %1022 = vmatpush3.bf16.msra.mxu0 %v1019_v40 }
  0xdd   : > { %1014 = vmatpush3.bf16.msra.mxu1 %v1011_v21 }
 0x1a9   : > { %v951_v26 = vpop.f32.mrb[0].mxu0 }
 0x1aa   : > { %v480_v27 = vadd.f32 %v951_v26, %v891_v25  ;;  %v474_v28 = vpop.f32.mrb[1].mxu0 }
 0x1ab   : > { %v475_v29 = vadd.f32 %v891_v25, %v474_v28 }
 0x1ac   : > { %v494_v32 = vmax.f32 %v480_v27, 0.0 }
 0x1ad   : > { %v493_v30 = vmax.f32 %v475_v29, 0.0  ;;  %v954_v31 = vpop.f32.mrb[2].mxu0 }
 0x1ae   : > { %v490_v33 = vadd.f32 %v954_v31, %v891_v25  ;;  %v484_v34 = vpop.f32.mrb[3].mxu0 }
 0x1af   : > { %v485_v35 = vadd.f32 %v891_v25, %v484_v34  ;;  %971 = vmatprep.mubr.msk.f32.mxu1 %vm512_vm1, %v493_v30 }
 0x1b0   : > { %972 = vmatmul.mubr.msk.f32.vlgmr.msra.gmra.mrb[0].mxu1 %vm512_vm1, %v494_v32  ;;  %v496_v37 = vmax.f32 %v490_v33, 0.0 }
 0x1b1   : > { %v495_v36 = vmax.f32 %v485_v35, 0.0 }
 0x1b3   : > { %974 = vmatprep.mubr.msk.f32.mxu1 %vm512_vm1, %v495_v36 }
 0x1b4   : > { %975 = vmatmul.mubr.msk.f32.gmra.mrb[2].mxu1 %vm512_vm1, %v496_v37 }
 0x283   : > { %v973_v42 = vpop.f32.mrb[0].mxu1 }
 0x284   : > { %v597_v43 = vadd.f32 %v973_v42, %v896_v41  ;;  %v591_v44 = vpop.f32.mrb[1].mxu1 }
 0x285   : > { %v592_v45 = vadd.f32 %v896_v41, %v591_v44 }
 0x286   : > { %v611_v48 = vmax.f32 %v597_v43, 0.0 }
 0x287   : > { %v610_v46 = vmax.f32 %v592_v45, 0.0  ;;  %v976_v47 = vpop.f32.mrb[2].mxu1 }
 0x288   : > { %v607_v49 = vadd.f32 %v976_v47, %v896_v41  ;;  %v601_v50 = vpop.f32.mrb[3].mxu1 }
 0x289   : > { %v602_v51 = vadd.f32 %v896_v41, %v601_v50  ;;  %985 = vmatprep.mubr.msk.f32.mxu0 %vm395_vm0, %v610_v46 }
 0x28a   : > { %986 = vmatmul.mubr.msk.f32.vlgmr.msra.gmra.mrb[4].mxu0 %vm395_vm0, %v611_v48  ;;  %v613_v53 = vmax.f32 %v607_v49, 0.0 }
 0x28b   : > { %v612_v52 = vmax.f32 %v602_v51, 0.0 }
 0x28d   : > { %988 = vmatprep.mubr.msk.f32.mxu0 %vm395_vm0, %v612_v52 }
 0x28e   : > { %989 = vmatmul.mubr.msk.f32.gmra.mrb[6].mxu0 %vm395_vm0, %v613_v53 }
 0x35d   : > { %v987_v55 = vpop.f32.mrb[4].mxu0 }
 0x35e   : > { %v709_v56 = vadd.f32 %v987_v55, %v901_v54  ;;  %v703_v57 = vpop.f32.mrb[5].mxu0 }
 0x35f   : > { %v704_v58 = vadd.f32 %v901_v54, %v703_v57 }
 0x360   : > { %723 = vst [vmem:[%s377_s8 + $0x8] sm:$0xff] %v709_v56 }
 0x361   : > { %722 = vst [vmem:[%s377_s8] sm:$0xff] %v704_v58  ;;  %v990_v59 = vpop.f32.mrb[6].mxu0 }
 0x362   : > { %v719_v60 = vadd.f32 %v990_v59, %v901_v54  ;;  %v713_v61 = vpop.f32.mrb[7].mxu0 }
 0x363   : > { %v714_v62 = vadd.f32 %v901_v54, %v713_v61 }
 0x364   : > { %725 = vst [vmem:[%s377_s8 + $0x18] sm:$0xff] %v719_v60 }
 0x365   : > { %724 = vst [vmem:[%s377_s8 + $0x10] sm:$0xff] %v714_v62 }
 0x366   : > { %1345 = shalt.err (!%p1342_p8)
}
 0x367   : > { %s1346_s19 = scalar_lea.hbm %s1775_s12, 512  ;;  %s1350_s8 = scalar_lea.hbm %s1826_s7, 1024 }
 0x368   : > { %p1347_p4 = scmp.ne.s32.totalorder %s1775_s12, %s1346_s19  ;;  %p1351_p0 = scmp.lt.u32.totalorder %s1775_s12, %s1826_s7 }
 0x369   : > { %p1352_p5 = scmp.lt.u32.totalorder %s1350_s8, %s1346_s19  ;;  %p1354_p6 = scmp.lt.u32.totalorder %s1346_s19, %s1775_s12 }
 0x36a   : > { %p1348_p10 = pnand %p1347_p4, %p1848_p9 }
 0x36b   : > { %p1353_p7 = por %p1352_p5, %p1351_p0 }
 0x36c   : > { %p1349_p11 = pneg %p1348_p10 }
 0x36d   : > { %p1355_p12 = por %p1354_p6, %p1353_p7 }
 0x36f   : > { %p1356_p13 = pnand %p1355_p12, %p1349_p11 }
 0x371   : > { %1359 = shalt.err (!%p1356_p13)
}
 0x372   : > { %s1422_s22 = smov 128   ;;  %s1423_s30 = smov 8  }
 0x373   : > { %1049 = dma.vmem_to_hbm [thread:$0]  (%p1848_p9), %s1770_s23, 512, %s1775_s12, %s727_s13, %s1422_s22, %s1422_s22, %s1423_s30  }
 0x374 PF: > { %s755_s14 = sand.u32 1, %s1398_s24   ;;  %p1849_p1 = scmp.ne.s32.totalorder %s1838_s21, 0 }
 0x375   : > { %p1850_p3 = scmp.ge.s32.totalorder %s1410_s27, 2  ;;  %s756_s29 = scalar_lea.sflag [#allocation4], %s755_s14 }
 0x377   : > { %p1075_p2 = pnand %p1850_p3, %p1849_p1 }
 0x379   : > { %1393 = dma.done.wait (!%p1075_p2), %s756_s29, 512  }
 0x37a   : > { %1395 = vsyncadd (!%p1075_p2), %s756_s29, 4294966784  ;;  %p23_p8 = scmp.ge.s32.totalorder %s1649_s11, 4   ;;  %s1851_s24 = smov %s1402_s25 }
 0x37b   : > { %s1852_s25 = smov %s1406_s26  ;;  %s1853_s26 = smov %s1660_s17 }
 0x37c   : > { %s1854_s27 = smov %s1649_s11  ;;  %25 = sbr.rel (!%p23_p8) target bundleno = 8 (0x8), region = 117 }
 0x383   :  { %761 = vsyncpa [#allocation3], 1 }
 0x384   :  { %763 = vsyncpa [#allocation3 + $0x1], 1 }
 0x385   :  { %764 = vsyncpa [#allocation6], 1 }
 0x386   :  { %765 = vsyncpa [#allocation9], 1 }
 0x387   :  { %766 = vsyncpa [#allocation12], 1 }
 0x388   :  { %767 = vsyncpa [#allocation4], 1 }
 0x389   :  { %769 = vsyncpa [#allocation4 + $0x1], 1 }

</bundles_post_ra>
